<compile_context>
chip_gen: v7x
topology: tpu7x:2x2x1
jax: 0.10.0
libtpu: 0.0.40
codegen_flags: <defaults>
</compile_context>

<pallas_src>
import functools
import math

import jax
import jax.numpy as jnp
from jax.experimental import pallas as pl
from jax.experimental.pallas import tpu as pltpu


def _label_smoothing_kernel(x_ref, tgt_ref, out_ref,
                            *, confidence, sv, ignore_index, plogp_const):
    x = x_ref[...].astype(jnp.float32)          # (TB, V) logits, f32 compute
    tgt = tgt_ref[...]                          # (TB, 1) int32
    TB, V = x.shape

    # --- stabilized softmax pieces (no full-tile log needed) ---
    m = jnp.max(x, axis=1, keepdims=True)                        # (TB, 1)
    z = x - m
    lse = jnp.log(jnp.sum(jnp.exp(z), axis=1, keepdims=True))    # (TB, 1)

    # --- algebraic form of sum_v p * z (no one-hot materialization) ---
    col = jax.lax.broadcasted_iota(jnp.int32, (TB, V), 1)
    z_sum = jnp.sum(z, axis=1, keepdims=True)                                    # (TB, 1)
    z_tgt = jnp.sum(jnp.where(col == tgt, z, 0.0), axis=1, keepdims=True)        # (TB, 1)
    z_ign = z[:, ignore_index:ignore_index + 1]      # static lane slice, (TB, 1)

    # sum_v p*logp = sv*sum(z) + (conf - sv)*z_tgt - sv*z_ign - lse*(1 - sv)
    ce = (jnp.float32(sv) * z_sum
          + jnp.float32(confidence - sv) * z_tgt
          - jnp.float32(sv) * z_ign
          - lse * jnp.float32(1.0 - sv))                                         # (TB, 1)

    valid = tgt != jnp.int32(ignore_index)
    row_loss = jnp.where(valid, jnp.float32(plogp_const) - ce, jnp.float32(0.0))

    # One partial sum per row-tile, broadcast into a lane-dense (1, 8, 128) output block.
    out_ref[...] = jnp.broadcast_to(jnp.sum(row_loss), out_ref.shape).astype(jnp.float32)


def _vmem_budget_bytes():
    """Generation-aware VMEM budget for the pipelined tiles."""
    phys = None
    try:
        info = pltpu.get_tpu_info()
        phys = getattr(info, "vmem_capacity_bytes", None)
    except Exception:
        phys = None
    if phys is None:
        return 28 << 20           # conservative: fits v7x's 64 MiB per-TC VMEM
    if phys <= (64 << 20):
        return 28 << 20           # v7x: leave headroom for Mosaic internal scratch
    return 64 << 20               # v5e / v6e: 128 MiB physical VMEM -> big tiles


def _choose_block_rows(batch, per_row_bytes, budget_bytes):
    tb = budget_bytes // max(per_row_bytes, 1)
    tb = min(tb, 8192)                            # sanity cap; beyond this, pure diminishing returns
    tb = max(8, (tb // 8) * 8)
    tb = min(tb, ((batch + 7) // 8) * 8)          # never bigger than the (8-padded) batch
    return max(8, tb)


def label_smoothing_loss(output, target, *, smoothing, vocab_size, ignore_index,
                         block_rows=None):
    """output: (B, V) float logits (f32/bf16); target: (B,) int labels. Returns scalar f32."""
    B, V = output.shape
    assert V == vocab_size
    assert 0.0 < smoothing <= 1.0
    assert 0 <= ignore_index < vocab_size, (
        "ignore_index must be a valid class index in [0, vocab_size): the closed-form "
        "p*log(p) and sum(p) constants assume the ignored column exists.")

    sv = smoothing / (vocab_size - 1)
    confidence = 1.0 - smoothing
    c_logc = confidence * math.log(confidence) if confidence > 0.0 else 0.0
    plogp_const = c_logc + (vocab_size - 2) * sv * math.log(sv)

    itemsize = jnp.dtype(output.dtype).itemsize
    budget = _vmem_budget_bytes()
    # Per-row VMEM footprint: double-buffered logits tile (input dtype) + ~3 live (TB, V) f32
    # temporaries (cast / z / masked select) + double-buffered 128-lane-padded target tile.
    per_row = 2 * V * itemsize + 3 * V * 4 + 2 * 128 * 4

    tb = block_rows if block_rows is not None else _choose_block_rows(B, per_row, budget)
    assert tb % 8 == 0

    # Pad batch to a multiple of the row tile; padded rows get ignore_index -> contribute 0.
    Bp = ((B + tb - 1) // tb) * tb
    if Bp != B:
        output = jnp.pad(output, ((0, Bp - B), (0, 0)))
        target = jnp.pad(target, (0, Bp - B), constant_values=ignore_index)
    target2d = target.astype(jnp.int32).reshape(Bp, 1)

    G = Bp // tb
    tile_need = per_row * tb + (2 << 20)          # + margin: output block, iota, misc
    vmem_limit = int(min(budget, max(tile_need, 8 << 20)))

    kernel = functools.partial(_label_smoothing_kernel,
                               confidence=confidence,
                               sv=sv,
                               ignore_index=ignore_index,
                               plogp_const=plogp_const)

    partials = pl.pallas_call(
        kernel,
        out_shape=jax.ShapeDtypeStruct((G, 8, 128), jnp.float32),
        grid_spec=pltpu.PrefetchScalarGridSpec(
            num_scalar_prefetch=0,
            grid=(G,),
            in_specs=[
                # TODO(synk): on v5e add pipeline_mode=pl.Buffered(3) to the logits spec if an
                # xprof trace shows exposed DMA waits with large tiles.
                pl.BlockSpec((tb, V), lambda i: (i, 0)),   # logits tile (double-buffered)
                pl.BlockSpec((tb, 1), lambda i: (i, 0)),   # target tile
            ],
            out_specs=pl.BlockSpec((1, 8, 128), lambda i: (i, 0, 0)),
        ),
        compiler_params=pltpu.CompilerParams(
            dimension_semantics=("parallel",),     # row tiles are independent -> megacore-friendly
            vmem_limit_bytes=vmem_limit,
        ),
    )(output, target2d)

    # Tiny cross-tile reduce (G scalars) done by XLA outside the kernel.
    return jnp.sum(partials[:, 0, 0])


def _reference(output, target, *, smoothing, vocab_size, ignore_index):
    # Pure-JAX mirror of the PyTorch forward (f32 math).
    output = output.astype(jnp.float32)
    sv = smoothing / (vocab_size - 1)
    confidence = 1.0 - smoothing
    logp = jax.nn.log_softmax(output, axis=1)
    one_hot = jnp.full((vocab_size,), sv, dtype=jnp.float32).at[ignore_index].set(0.0)
    p = jnp.tile(one_hot[None, :], (output.shape[0], 1))
    p = p.at[jnp.arange(output.shape[0]), target].set(confidence)
    p = jnp.where((target == ignore_index)[:, None], 0.0, p)
    safe_p = jnp.where(p > 0, p, 1.0)
    return jnp.sum(jnp.where(p > 0, p * (jnp.log(safe_p) - logp), 0.0))


if __name__ == "__main__":
    B, V = 30, 128          # batch x n_classes (lane-dense vocab)
    smoothing = 0.1
    ignore_index = 0

    key = jax.random.PRNGKey(0)
    k1, k2 = jax.random.split(key)
    logits_f32 = jax.random.normal(k1, (B, V), dtype=jnp.float32)
    target = jax.random.randint(k2, (B,), 0, V, dtype=jnp.int32)  # may hit ignore_index

    # --- f32 input, forced multi-tile grid (exercises tiling + partial sums + padding) ---
    loss_f32 = label_smoothing_loss(logits_f32, target,
                                    smoothing=smoothing, vocab_size=V,
                                    ignore_index=ignore_index, block_rows=8)
    loss_f32 = jax.block_until_ready(loss_f32)
    ref_f32 = _reference(logits_f32, target, smoothing=smoothing,
                         vocab_size=V, ignore_index=ignore_index)
    assert jnp.allclose(loss_f32, ref_f32, rtol=1e-4, atol=1e-3), (loss_f32, ref_f32)

    # --- bf16 input passed straight through (no wrapper f32 copy), auto tile size ---
    logits_bf16 = logits_f32.astype(jnp.bfloat16)
    loss_bf16 = label_smoothing_loss(logits_bf16, target,
                                     smoothing=smoothing, vocab_size=V,
                                     ignore_index=ignore_index)
    loss_bf16 = jax.block_until_ready(loss_bf16)
    ref_bf16 = _reference(logits_bf16, target, smoothing=smoothing,
                          vocab_size=V, ignore_index=ignore_index)
    assert jnp.allclose(loss_bf16, ref_bf16, rtol=1e-3, atol=1e-2), (loss_bf16, ref_bf16)

    print("KERNEL_OK")
</pallas_src>

<mosaic_0001>
module attributes {stable_mosaic.version = 11 : i64} {
  func.func @_label_smoothing_kernel(%arg0: i32, %arg1: memref<8x128xf32, #tpu.memory_space<vmem>>, %arg2: memref<8x1xi32, #tpu.memory_space<vmem>>, %arg3: memref<1x8x128xf32, #tpu.memory_space<vmem>>) attributes {dimension_semantics = [#tpu.dimension_semantics<parallel>], iteration_bounds = array<i64: 4>, scalar_prefetch = 0 : i64, scratch_operands = 0 : i64, tpu.core_type = #tpu.core_type<tc>, window_params = [{transform_indices = @transform_0, window_bounds = array<i64: 8, 128>}, {transform_indices = @transform_1, window_bounds = array<i64: 8, 1>}, {transform_indices = @transform_2, window_bounds = array<i64: 1, 8, 128>}]} {
    %c0 = arith.constant 0 : index
    %c0_0 = arith.constant 0 : index
    %0 = vector.load %arg1[%c0, %c0_0] : memref<8x128xf32, #tpu.memory_space<vmem>>, vector<8x128xf32>
    %c0_1 = arith.constant 0 : index
    %c0_2 = arith.constant 0 : index
    %1 = vector.load %arg2[%c0_1, %c0_2] : memref<8x1xi32, #tpu.memory_space<vmem>>, vector<8x1xi32>
    %cst = arith.constant dense<0xFF800000> : vector<8xf32>
    %2 = vector.multi_reduction <maximumf>, %0, %cst [1] : vector<8x128xf32> to vector<8xf32>
    %3 = vector.shape_cast %2 : vector<8xf32> to vector<8x1xf32>
    %4 = vector.broadcast %3 : vector<8x1xf32> to vector<8x128xf32>
    %5 = arith.subf %0, %4 : vector<8x128xf32>
    %6 = math.exp %5 : vector<8x128xf32>
    %cst_3 = arith.constant dense<0.000000e+00> : vector<8xf32>
    %7 = vector.multi_reduction <add>, %6, %cst_3 [1] : vector<8x128xf32> to vector<8xf32>
    %8 = vector.shape_cast %7 : vector<8xf32> to vector<8x1xf32>
    %9 = math.log %8 : vector<8x1xf32>
    %10 = tpu.iota {dimensions = array<i32: 1>} : vector<8x128xi32>
    %cst_4 = arith.constant dense<0.000000e+00> : vector<8xf32>
    %11 = vector.multi_reduction <add>, %5, %cst_4 [1] : vector<8x128xf32> to vector<8xf32>
    %12 = vector.shape_cast %11 : vector<8xf32> to vector<8x1xf32>
    %13 = vector.broadcast %1 : vector<8x1xi32> to vector<8x128xi32>
    %14 = arith.cmpi eq, %10, %13 : vector<8x128xi32>
    %cst_5 = arith.constant 0.000000e+00 : f32
    %15 = vector.broadcast %cst_5 : f32 to vector<8x128xf32>
    %16 = arith.select %14, %5, %15 : vector<8x128xi1>, vector<8x128xf32>
    %cst_6 = arith.constant dense<0.000000e+00> : vector<8xf32>
    %17 = vector.multi_reduction <add>, %16, %cst_6 [1] : vector<8x128xf32> to vector<8xf32>
    %18 = vector.shape_cast %17 : vector<8xf32> to vector<8x1xf32>
    %19 = vector.extract_strided_slice %5 {offsets = [0, 0], sizes = [8, 1], strides = [1, 1]} : vector<8x128xf32> to vector<8x1xf32>
    %cst_7 = arith.constant 7.87401571E-4 : f32
    %20 = vector.broadcast %cst_7 : f32 to vector<8x1xf32>
    %21 = arith.mulf %20, %12 : vector<8x1xf32>
    %cst_8 = arith.constant 0.899212599 : f32
    %22 = vector.broadcast %cst_8 : f32 to vector<8x1xf32>
    %23 = arith.mulf %22, %18 : vector<8x1xf32>
    %24 = arith.addf %21, %23 : vector<8x1xf32>
    %cst_9 = arith.constant 7.87401571E-4 : f32
    %25 = vector.broadcast %cst_9 : f32 to vector<8x1xf32>
    %26 = arith.mulf %25, %19 : vector<8x1xf32>
    %27 = arith.subf %24, %26 : vector<8x1xf32>
    %cst_10 = arith.constant 0.999212622 : f32
    %28 = vector.broadcast %cst_10 : f32 to vector<8x1xf32>
    %29 = arith.mulf %9, %28 : vector<8x1xf32>
    %30 = arith.subf %27, %29 : vector<8x1xf32>
    %c0_i32 = arith.constant 0 : i32
    %31 = vector.broadcast %c0_i32 : i32 to vector<8x1xi32>
    %32 = arith.cmpi ne, %1, %31 : vector<8x1xi32>
    %cst_11 = arith.constant -0.803874313 : f32
    %33 = vector.broadcast %cst_11 : f32 to vector<8x1xf32>
    %34 = arith.subf %33, %30 : vector<8x1xf32>
    %cst_12 = arith.constant 0.000000e+00 : f32
    %35 = vector.broadcast %cst_12 : f32 to vector<8x1xf32>
    %36 = arith.select %32, %34, %35 : vector<8x1xi1>, vector<8x1xf32>
    %37 = vector.shape_cast %36 : vector<8x1xf32> to vector<1x8x1xf32>
    %cst_13 = arith.constant dense<0.000000e+00> : vector<1xf32>
    %38 = vector.multi_reduction <add>, %37, %cst_13 [1, 2] : vector<1x8x1xf32> to vector<1xf32>
    %39 = vector.shape_cast %38 : vector<1xf32> to vector<1x1x1xf32>
    %40 = vector.extract %39[0, 0, 0] : f32 from vector<1x1x1xf32>
    %41 = vector.broadcast %40 : f32 to vector<1x8x128xf32>
    %c0_14 = arith.constant 0 : index
    %c0_15 = arith.constant 0 : index
    %c0_16 = arith.constant 0 : index
    %42 = vector.load %arg3[%c0_14, %c0_15, %c0_16] : memref<1x8x128xf32, #tpu.memory_space<vmem>>, vector<1x8x128xf32>
    tpu.vector_store %arg3[%c0_14, %c0_15, %c0_16], %41 {strides = array<i32>} : memref<1x8x128xf32, #tpu.memory_space<vmem>>, vector<1x8x128xf32>,
    return
  }
  func.func @transform_0(%arg0: i32) -> (i32, i32) {
    %c0_i32 = arith.constant 0 : i32
    %c0_i32_0 = arith.constant 0 : i32
    return %arg0, %c0_i32 : i32, i32
  }
  func.func @transform_1(%arg0: i32) -> (i32, i32) {
    %c0_i32 = arith.constant 0 : i32
    %c0_i32_0 = arith.constant 0 : i32
    return %arg0, %c0_i32 : i32, i32
  }
  func.func @transform_2(%arg0: i32) -> (i32, i32, i32) {
    %c0_i32 = arith.constant 0 : i32
    %c0_i32_0 = arith.constant 0 : i32
    %c0_i32_1 = arith.constant 0 : i32
    return %arg0, %c0_i32, %c0_i32_0 : i32, i32, i32
  }
}

</mosaic_0001>

<bundles_post_ra>
// kernel: tpu_custom_call.1
= control target key start
LH: loop header
LB: loop body
LE: loop exit
PB: predicated region body
PF: predicated region fallthrough
CT: control target
= control target key end

     0   :  { %7 = vsyncpa [#allocation3], 0  ;;  %s528_s0 = inlined_call_operand.vmem [shape: f32[32,128], index: 0, kind: input, shape index: {}]   ;;  %s529_s1 = inlined_call_operand.vmem [shape: s32[32,1], index: 1, kind: input, shape index: {}]   ;;  %s530_s2 = inlined_call_operand.hbm [shape: f32[4,8,128], index: 2, kind: output, shape index: {}]  }
   0x1   :  { %9 = vsyncpa [#allocation3 + $0x1], 0  ;;  %s425_s9 = smov 0   ;;  %s427_s10 = smov 0  }
   0x2   :  { %s429_s11 = smov 0   ;;  %s431_s12 = smov 0  }
   0x3 LB: > { %s446_s13 = sadd.s32 4294967295, %s406_s12   ;;  %s286_s14 = sadd.s32 4294967294, %s406_s12   ;;  %s406_s12 = sphi %s431_s12, %s536_s12   ;;  %s402_s11 = sphi %s429_s11, %s535_s11   ;;  %s398_s10 = sphi %s427_s10, %s534_s10   ;;  %s394_s9 = sphi %s425_s9, %s533_s9  }
   0x4   : > { %s450_s15 = sadd.s32 1, %s406_s12   ;;  %s74_s16 = sadd.s32 1, %s402_s11 }
   0x5   : > { %s71_s17 = ssub.s32 %s406_s12, %s450_s15  ;;  %p84_p0 = scmp.ne.s32.totalorder %s402_s11, %s398_s10 }
   0x6   : > { %p72_p1 = scmp.eq.s32.totalorder %s71_s17, 0  ;;  %p85_p2 = scmp.eq.s32.totalorder %s446_s13, 3 }
   0x7   : > { %p90_p3 = scmp.ne.s32.totalorder %s398_s10, %s394_s9  ;;  %p91_p4 = scmp.eq.s32.totalorder %s286_s14, 3 }
   0x8   : > { %s461_s18 = scalar_select %p72_p1, %s402_s11, %s74_s16  }
   0x9   : > { %p463_p5 = por %p85_p2, %p84_p0  ;;  %p467_p6 = por %p91_p4, %p90_p3 }
   0xa   : > { %p289_p7 = scmp.ge.s32.totalorder %s406_s12, 1  ;;  %p123_p8 = scmp.lt.s32.totalorder %s406_s12, 5 }
   0xc   : > { %p124_p9 = pnand %p289_p7, %p123_p8 }
   0xd   : > { %p148_p10 = scmp.lt.s32.totalorder (!%p124_p9), %s446_s13, 3  ;;  %v408_v0 = vmov (!%p124_p9), 0   ;;  %v167_v6 = vlaneseq (!%p124_p9)  ;;  %vm188_vm2 = vcmask (!%p124_p9), 7168   ;;  %s145_s29 = sand.u32 (!%p124_p9), 1, %s398_s10  }
   0xe   : > { %127 = sbr.rel (%p124_p9) target bundleno = 565 (0x235), region = 28  ;;  %339 = vset.pattern.permute.xlu0 (!%p124_p9), %v408_v0  ;;  %s290_s30 = sshll.u32 (!%p124_p9), %s145_s29, 3 }
   0xf   : > { %v168_v8 = vand.u32 (!%p124_p9), 127, %v167_v6  ;;  %s147_s3 = scalar_lea.vmem (!%p124_p9), [#allocation2], %s290_s30  ;;  %s294_s5 = sshll.u32 (!%p124_p9), %s446_s13, 7 }
  0x10   : > { %s215_s4 = sshll.u32 (!%p124_p9), %s147_s3, 4  ;;  %s488_s14 = scalar_lea.hbm (!%p124_p9), %s530_s2, %s294_s5  ;;  %s483_s4 = int_to_ptr.vmem [resolvable:$true] %s215_s4 }
  0x11   : > { %s202_s16 = scalar_lea.sflag (!%p124_p9), [#allocation3], %s145_s29  ;;  %s344_s17 = scalar_lea.vmem (!%p124_p9), %s483_s4, 128 }
  0x12   : > { %p345_p11 = scmp.ne.s32.totalorder (!%p124_p9), %s483_s4, %s344_s17 }
  0x14   : > { %p346_p12 = pnand (!%p124_p9), %p345_p11, %p463_p5 }
  0x15   : > { %s149_s21 = scalar_select %p148_p10, %s446_s13, 3 }
  0x16   : > { %p347_p13 = pneg %p346_p12  ;;  %s409_s13 = smov [#allocation2]  }
  0x17   : > { %s291_s22 = sshll.u32 %s149_s21, 3  ;;  %s348_s21 = sshll.u32 %s409_s13, 4  ;;  %s349_s21 = int_to_ptr.vmem [resolvable:$false] %s348_s21 }
  0x18   : > { %s151_s25 = scalar_lea.vmem %s528_s0, %s291_s22  ;;  %s155_s28 = scalar_lea.vmem %s529_s1, %s291_s22 }
  0x19   : > { %v156_v1 = vld [vmem:[%s151_s25] sm:$0xff]  ;;  %s350_s22 = scalar_lea.vmem %s349_s21, 256  ;;  %p351_p0 = scmp.lt.s32.totalorder %s483_s4, %s349_s21 }
  0x1a   : > { %158 = vmax.xlane.f32.xlu0 %v156_v1  ;;  %v157_v2 = vld [vmem:[%s155_s28] sm:$0xff]  ;;  %p352_p1 = scmp.lt.s32.totalorder %s350_s22, %s344_s17 }
  0x1b   : > { %vm185_vm1 = vcmp.ne.s32.totalorder %v157_v2, 0 }
  0x1c   : > { %p353_p2 = por %p352_p1, %p351_p0 }
  0x1e   : > { %p354_p3 = pnand %p353_p2, %p347_p13 }
  0x30   : > { %172 = vperm.xlu0 %339, %v157_v2  }
  0xa7   : > { %v159_v3 = vpop.xlane.xlu0 %158 }
  0xa8   : > { %v160_v4 = vsub.f32 %v156_v1, %v159_v3 }
  0xaa   : > { %v161_v5 = vmul.f32 1.442695, %v160_v4  ;;  %v181_v17 = vmul.f32 0.0007874016, %v160_v4 }
  0xac   : > { %340 = vpow2.f32 %v161_v5 }
  0xaf   : > { %v173_v9 = vpop.permute.xlu0 %172 }
  0xb0   : > { %vm174_vm0 = vcmp.eq.s32.totalorder %v168_v8, %v173_v9 }
  0xb1   : > { %v175_v10 = vsel %vm174_vm0, %v160_v4, 0.0 }
  0xb6   : > { %v341_v7 = vpop.eup %340 }
  0xb7   : > { %163 = vadd.xlane.f32.xlu1 %v341_v7 }
  0xbb   : > { %169 = vadd.xlane.f32.xlu1 %v160_v4 }
  0xbf   : > { %176 = vadd.xlane.f32.xlu1 %v175_v10 }
 0x144   : > { %v164_v11 = vpop.xlane.xlu1 %163 }
 0x145   : > { %342 = vlog2.f32 %v164_v11 }
 0x148   : > { %v170_v12 = vpop.xlane.xlu1 %169 }
 0x149   : > { %v178_v14 = vmul.f32 0.0007874016, %v170_v12 }
 0x14c   : > { %v177_v13 = vpop.xlane.xlu1 %176 }
 0x14d   : > { %v179_v15 = vmul.f32 0.8992126, %v177_v13 }
 0x14f   : > { %v343_v16 = vpop.eup %342  ;;  %v180_v18 = vadd.f32 %v179_v15, %v178_v14 }
 0x150   : > { %v166_v19 = vmul.f32 0.6931472, %v343_v16 }
 0x151   : > { %v182_v20 = vsub.f32 %v180_v18, %v181_v17 }
 0x152   : > { %v183_v21 = vmul.f32 0.9992126, %v166_v19 }
 0x154   : > { %v184_v22 = vsub.f32 %v182_v20, %v183_v21 }
 0x156   : > { %v186_v23 = vsub.f32 -0.8038743, %v184_v22 }
 0x158   : > { %v187_v24 = vsel %vm185_vm1, %v186_v23, 0.0 }
 0x159   : > { %v189_v25 = vsel %vm188_vm2, %v187_v24, 0.0 }
 0x15a   : > { %190 = vadd.xlane.f32.xlu1 %v189_v25 }
 0x1e7   : > { %v191_v26 = vpop.xlane.xlu1 %190 }
 0x1e8   : > { %v192_v27 = vrot.slane %v191_v26, 4 }
 0x1ea   : > { %v193_v28 = vadd.f32 %v192_v27, %v191_v26 }
 0x1ec   : > { %v194_v29 = vrot.slane %v193_v28, 2 }
 0x1ee   : > { %v195_v30 = vadd.f32 %v194_v29, %v193_v28 }
 0x1f0   : > { %v196_v31 = vrot.slane %v195_v30, 1 }
 0x1f2   : > { %v197_v32 = vadd.f32 %v196_v31, %v195_v30 }
 0x1f4   : > { %297 = vpush %v197_v32 }
 0x225   : > { %s298_s6 = spop %297 }
 0x226   : > { %v199_v33 = vstv %s298_s6 }
 0x227   : > { %200 = vst [vmem:[%s147_s3] sm:$0xff] %v199_v33 }
 0x228   : > { %357 = shalt.err (!%p354_p3)
}
 0x229   : > { %s358_s23 = scalar_lea.hbm %s488_s14, 128  ;;  %s362_s26 = scalar_lea.hbm %s530_s2, 512 }
 0x22a   : > { %p359_p4 = scmp.ne.s32.totalorder %s488_s14, %s358_s23  ;;  %p363_p9 = scmp.lt.u32.totalorder %s488_s14, %s530_s2 }
 0x22b   : > { %p364_p10 = scmp.lt.u32.totalorder %s362_s26, %s358_s23  ;;  %p366_p12 = scmp.lt.u32.totalorder %s358_s23, %s488_s14 }
 0x22c   : > { %p360_p7 = pnand %p359_p4, %p463_p5 }
 0x22d   : > { %p365_p11 = por %p364_p10, %p363_p9 }
 0x22e   : > { %p361_p8 = pneg %p360_p7 }
 0x22f   : > { %p367_p13 = por %p366_p12, %p365_p11 }
 0x231   : > { %p368_p0 = pnand %p367_p13, %p361_p8 }
 0x233   : > { %371 = shalt.err (!%p368_p0)
}
 0x234   : > { %299 = dma.vmem_to_hbm [thread:$0]  (%p463_p5), %s483_s4, 128, %s488_s14, %s202_s16  }
 0x235 PF: > { %p305_p1 = scmp.ge.s32.totalorder %s406_s12, 2  ;;  %s227_s29 = sand.u32 1, %s394_s9  }
 0x236   : > { %s228_s30 = scalar_lea.sflag [#allocation3], %s227_s29 }
 0x237   : > { %p302_p2 = pnand %p305_p1, %p467_p6 }
 0x239   : > { %389 = dma.done.wait (!%p302_p2), %s228_s30, 128  }
 0x23a   : > { %391 = vsyncadd (!%p302_p2), %s228_s30, 4294967168  ;;  %p12_p3 = scmp.ge.s32.totalorder %s450_s15, 6   ;;  %s533_s9 = smov %s398_s10 }
 0x23b   : > { %s534_s10 = smov %s402_s11  ;;  %s535_s11 = smov %s461_s18 }
 0x23c   : > { %s536_s12 = smov %s450_s15  ;;  %14 = sbr.rel (!%p12_p3) target bundleno = 3 (0x3), region = 66 }
 0x243   :  { %233 = vsyncpa [#allocation3], 1 }
 0x244   :  { %235 = vsyncpa [#allocation3 + $0x1], 1 }

</bundles_post_ra>
